<compile_context>
chip_gen: v6e
topology: v6e:2x2x1
jax: 0.10.0
libtpu: 0.0.40
codegen_flags: <defaults>
</compile_context>

<pallas_src>
import functools

import numpy as np
import jax
import jax.numpy as jnp
from jax.experimental import pallas as pl
from jax.experimental.pallas import tpu as pltpu


def _length_regulator_kernel(mel_len_ref, x_ref, ci_ref, ce_ref, out_ref,
                             *, mm_precision):
    """mel_len_ref: (B,) i32 in SMEM (scalar prefetch).
       x_ref:       (1, K, H)  per-batch input block (K = padded T_in).
       ci_ref:      (1, 1, K)  i32 inclusive cumulative durations.
       ce_ref:      (1, 1, K)  i32 exclusive cumulative durations.
       out_ref:     (1, tile_t, H) output tile."""
    b = pl.program_id(0)
    t = pl.program_id(1)
    tile_t = out_ref.shape[1]
    tile_start = t * tile_t
    mel_b = mel_len_ref[b]

    # Tiles entirely inside the padding region: no one-hot, no matmul.
    @pl.when(tile_start >= mel_b)
    def _pad_tile():
        out_ref[...] = jnp.zeros_like(out_ref)

    @pl.when(tile_start < mel_b)
    def _live_tile():
        # Output-frame positions for this tile (int32, offset by tile index).
        t_pos = tile_start + jax.lax.broadcasted_iota(jnp.int32, (tile_t, 1), 0)
        ci = ci_ref[0, 0, :]                                   # (K,) i32
        ce = ce_ref[0, 0, :]                                   # (K,) i32
        # sel[t, j] == True  iff  output frame (tile_start+t) copies input token j.
        # Integer compares stay as mask vregs; single cast feeds the MXU.
        sel = (t_pos >= ce[None, :]) & (t_pos < ci[None, :])   # (tile_t, K) bool
        onehot = sel.astype(x_ref.dtype)
        # Gather-as-matmul: frames past mel_len select nothing -> zero padding.
        out = jnp.dot(onehot, x_ref[0],
                      preferred_element_type=jnp.float32,
                      precision=mm_precision)
        out_ref[0] = out.astype(out_ref.dtype)


def length_regulator(x, duration, max_len, *, tile_t=32):
    """x: (B, T_in, H); duration: (B, T_in) int; max_len: static int.

    Returns (output (B, max_len, H), mel_len (B,) int32)."""
    B, T_in, H = x.shape
    duration = duration.astype(jnp.int32)
    T_out = int(max_len)

    # mel_len computed in the wrapper (not a kernel output).
    mel_len = jnp.sum(duration, axis=1).astype(jnp.int32)      # (B,)

    # Pad the contraction dim (T_in) to a lane-dense multiple of 128 with
    # zero-duration tokens; they are never selected, so the pad is exact.
    K = max(128, int(pl.cdiv(T_in, 128)) * 128)
    if K != T_in:
        x_p = jnp.pad(x, ((0, 0), (0, K - T_in), (0, 0)))
        dur_p = jnp.pad(duration, ((0, 0), (0, K - T_in)))
    else:
        x_p, dur_p = x, duration

    # Cumulative durations in the wrapper (XLA cumsum), shaped (B, 1, K) so the
    # BlockSpec's trailing two dims are (1, K) = (full, lane-dense).
    cum_incl = jnp.cumsum(dur_p, axis=1).astype(jnp.int32)
    cum_excl = cum_incl - dur_p
    cum_incl = cum_incl[:, None, :]
    cum_excl = cum_excl[:, None, :]

    # Tile T_out; pad to a multiple of tile_t and slice the result back.
    n_t = int(pl.cdiv(T_out, tile_t))
    T_pad = n_t * tile_t

    # bf16 one-hot gather is an exact single MXU pass; f32 needs HIGHEST to
    # keep the copy bit-exact.
    mm_precision = (jax.lax.Precision.HIGHEST if x.dtype == jnp.float32
                    else jax.lax.Precision.DEFAULT)
    kernel = functools.partial(_length_regulator_kernel,
                               mm_precision=mm_precision)

    grid_spec = pltpu.PrefetchScalarGridSpec(
        num_scalar_prefetch=1,                       # mel_len -> SMEM
        grid=(B, n_t),
        in_specs=[
            pl.BlockSpec((1, K, H), lambda b, t, ml: (b, 0, 0)),
            pl.BlockSpec((1, 1, K), lambda b, t, ml: (b, 0, 0)),
            pl.BlockSpec((1, 1, K), lambda b, t, ml: (b, 0, 0)),
        ],
        out_specs=pl.BlockSpec((1, tile_t, H), lambda b, t, ml: (b, t, 0)),
    )

    out = pl.pallas_call(
        kernel,
        grid_spec=grid_spec,
        out_shape=jax.ShapeDtypeStruct((B, T_pad, H), x.dtype),
        compiler_params=pltpu.CompilerParams(
            dimension_semantics=("parallel", "parallel")),
    )(mel_len, x_p, cum_incl, cum_excl)

    if T_pad != T_out:
        out = out[:, :T_out, :]
    return out, mel_len


if __name__ == "__main__":
    key = jax.random.PRNGKey(0)
    kx, kd = jax.random.split(key)

    B, T_IN, H = 2, 8, 128        # H multiple of 128 -> lane-dense output stores
    MAX_LEN = 64                  # static mel length (>= max possible sum(duration))

    x = jax.random.normal(kx, (B, T_IN, H), jnp.float32)
    duration = jax.random.randint(kd, (B, T_IN), 0, 5, dtype=jnp.int32)

    out, mel_len = length_regulator(x, duration, MAX_LEN, tile_t=32)
    jax.block_until_ready((out, mel_len))

    # Reference: the PyTorch expand / concat / pad loop, in numpy.
    x_np = np.asarray(x)
    dur_np = np.asarray(duration)
    ref = np.zeros((B, MAX_LEN, H), np.float32)
    ref_len = dur_np.sum(axis=1)
    for b in range(B):
        expanded = np.repeat(x_np[b], dur_np[b], axis=0)
        n = min(expanded.shape[0], MAX_LEN)
        ref[b, :n] = expanded[:n]

    assert out.shape == (B, MAX_LEN, H)
    assert mel_len.shape == (B,)
    np.testing.assert_array_equal(np.asarray(mel_len), ref_len)
    # Pure selection/copy op: assert exact equality (guards against a lossy
    # low-precision matmul path silently creeping in).
    np.testing.assert_allclose(np.asarray(out), ref, rtol=0.0, atol=0.0)
    print("KERNEL_OK")
</pallas_src>

<mosaic_0001>
module attributes {stable_mosaic.version = 11 : i64} {
  func.func @_length_regulator_kernel(%arg0: i32, %arg1: i32, %arg2: memref<2xi32, #tpu.memory_space<smem>>, %arg3: memref<1x128x128xf32, #tpu.memory_space<vmem>>, %arg4: memref<1x1x128xi32, #tpu.memory_space<vmem>>, %arg5: memref<1x1x128xi32, #tpu.memory_space<vmem>>, %arg6: memref<1x32x128xf32, #tpu.memory_space<vmem>>) attributes {dimension_semantics = [#tpu.dimension_semantics<parallel>, #tpu.dimension_semantics<parallel>], iteration_bounds = array<i64: 2, 2>, scalar_prefetch = 1 : i64, scratch_operands = 0 : i64, tpu.core_type = #tpu.core_type<tc>, window_params = [{transform_indices = @transform_0, window_bounds = array<i64: 1, 128, 128>}, {transform_indices = @transform_1, window_bounds = array<i64: 1, 1, 128>}, {transform_indices = @transform_2, window_bounds = array<i64: 1, 1, 128>}, {transform_indices = @transform_3, window_bounds = array<i64: 1, 32, 128>}]} {
    %c32_i32 = arith.constant 32 : i32
    %0 = arith.muli %arg1, %c32_i32 : i32
    %1 = arith.index_cast %arg0 : i32 to index
    %2 = memref.load %arg2[%1] : memref<2xi32, #tpu.memory_space<smem>>
    %3 = arith.cmpi sge, %0, %2 : i32
    %4 = arith.extui %3 : i1 to i32
    %c0_i32 = arith.constant 0 : i32
    %5 = arith.cmpi ne, %4, %c0_i32 : i32
    scf.if %5 {
      %cst = arith.constant 0.000000e+00 : f32
      %9 = vector.broadcast %cst : f32 to vector<1x32x128xf32>
      %c0 = arith.constant 0 : index
      %c0_1 = arith.constant 0 : index
      %c0_2 = arith.constant 0 : index
      %10 = vector.load %arg6[%c0, %c0_1, %c0_2] : memref<1x32x128xf32, #tpu.memory_space<vmem>>, vector<1x32x128xf32>
      tpu.vector_store %arg6[%c0, %c0_1, %c0_2], %9 {strides = array<i32>} : memref<1x32x128xf32, #tpu.memory_space<vmem>>, vector<1x32x128xf32>,
    } else {
    }
    %6 = arith.cmpi slt, %0, %2 : i32
    %7 = arith.extui %6 : i1 to i32
    %c0_i32_0 = arith.constant 0 : i32
    %8 = arith.cmpi ne, %7, %c0_i32_0 : i32
    scf.if %8 {
      %9 = tpu.iota {dimensions = array<i32: 0>} : vector<32x1xi32>
      %10 = vector.broadcast %0 : i32 to vector<32x1xi32>
      %11 = arith.addi %10, %9 : vector<32x1xi32>
      %c0 = arith.constant 0 : index
      %c0_1 = arith.constant 0 : index
      %c0_2 = arith.constant 0 : index
      %12 = vector.load %arg4[%c0, %c0_1, %c0_2] : memref<1x1x128xi32, #tpu.memory_space<vmem>>, vector<1x1x128xi32>
      %13 = vector.shape_cast %12 : vector<1x1x128xi32> to vector<128xi32>
      %c0_3 = arith.constant 0 : index
      %c0_4 = arith.constant 0 : index
      %c0_5 = arith.constant 0 : index
      %14 = vector.load %arg5[%c0_3, %c0_4, %c0_5] : memref<1x1x128xi32, #tpu.memory_space<vmem>>, vector<1x1x128xi32>
      %15 = vector.shape_cast %14 : vector<1x1x128xi32> to vector<128xi32>
      %16 = vector.shape_cast %15 : vector<128xi32> to vector<1x128xi32>
      %17 = vector.broadcast %11 : vector<32x1xi32> to vector<32x128xi32>
      %18 = vector.broadcast %16 : vector<1x128xi32> to vector<32x128xi32>
      %19 = arith.cmpi sge, %17, %18 : vector<32x128xi32>
      %20 = vector.shape_cast %13 : vector<128xi32> to vector<1x128xi32>
      %21 = vector.broadcast %11 : vector<32x1xi32> to vector<32x128xi32>
      %22 = vector.broadcast %20 : vector<1x128xi32> to vector<32x128xi32>
      %23 = arith.cmpi slt, %21, %22 : vector<32x128xi32>
      %24 = arith.andi %19, %23 : vector<32x128xi1>
      %25 = arith.extui %24 : vector<32x128xi1> to vector<32x128xi32>
      %26 = arith.sitofp %25 : vector<32x128xi32> to vector<32x128xf32>
      %c0_6 = arith.constant 0 : index
      %c0_7 = arith.constant 0 : index
      %c0_8 = arith.constant 0 : index
      %27 = vector.load %arg3[%c0_6, %c0_7, %c0_8] : memref<1x128x128xf32, #tpu.memory_space<vmem>>, vector<1x128x128xf32>
      %28 = vector.shape_cast %27 : vector<1x128x128xf32> to vector<128x128xf32>
      %cst = arith.constant dense<0.000000e+00> : vector<32x128xf32>
      %29 = tpu.matmul %26, %28, %cst {dimension_numbers = #tpu.dot_dimension_numbers<[1], [0], [0], [1], [0, 0, 1, 1], [], []>, precision = #tpu.contract_precision<fp32>} : vector<32x128xf32>, vector<128x128xf32>, vector<32x128xf32> -> vector<32x128xf32>
      %c0_9 = arith.constant 0 : index
      %c0_10 = arith.constant 0 : index
      %c0_11 = arith.constant 0 : index
      %30 = vector.load %arg6[%c0_9, %c0_10, %c0_11] : memref<1x32x128xf32, #tpu.memory_space<vmem>>, vector<1x32x128xf32>
      %31 = vector.shape_cast %30 : vector<1x32x128xf32> to vector<32x128xf32>
      %32 = vector.shape_cast %29 : vector<32x128xf32> to vector<1x32x128xf32>
      tpu.vector_store %arg6[%c0_9, %c0_10, %c0_11], %32 {strides = array<i32>} : memref<1x32x128xf32, #tpu.memory_space<vmem>>, vector<1x32x128xf32>,
    } else {
    }
    return
  }
  func.func @transform_0(%arg0: i32, %arg1: i32, %arg2: memref<2xi32, #tpu.memory_space<smem>>) -> (i32, i32, i32) {
    %c0_i32 = arith.constant 0 : i32
    %c0_i32_0 = arith.constant 0 : i32
    %c0_i32_1 = arith.constant 0 : i32
    return %arg0, %c0_i32, %c0_i32_0 : i32, i32, i32
  }
  func.func @transform_1(%arg0: i32, %arg1: i32, %arg2: memref<2xi32, #tpu.memory_space<smem>>) -> (i32, i32, i32) {
    %c0_i32 = arith.constant 0 : i32
    %c0_i32_0 = arith.constant 0 : i32
    %c0_i32_1 = arith.constant 0 : i32
    return %arg0, %c0_i32, %c0_i32_0 : i32, i32, i32
  }
  func.func @transform_2(%arg0: i32, %arg1: i32, %arg2: memref<2xi32, #tpu.memory_space<smem>>) -> (i32, i32, i32) {
    %c0_i32 = arith.constant 0 : i32
    %c0_i32_0 = arith.constant 0 : i32
    %c0_i32_1 = arith.constant 0 : i32
    return %arg0, %c0_i32, %c0_i32_0 : i32, i32, i32
  }
  func.func @transform_3(%arg0: i32, %arg1: i32, %arg2: memref<2xi32, #tpu.memory_space<smem>>) -> (i32, i32, i32) {
    %c0_i32 = arith.constant 0 : i32
    %c0_i32_0 = arith.constant 0 : i32
    return %arg0, %arg1, %c0_i32 : i32, i32, i32
  }
}

</mosaic_0001>

<bundles_post_ra>
// kernel: tpu_custom_call.1
= control target key start
LH: loop header
LB: loop body
LE: loop exit
PB: predicated region body
PF: predicated region fallthrough
CT: control target
= control target key end

     0   :  { %s1858_s15 = smov [#allocation3]   ;;  %s2595_s0 = inlined_call_operand.hbm [shape: s32[2], index: 0, kind: input, shape index: {}]   ;;  %s2596_s1 = inlined_call_operand.hbm [shape: f32[2,128,128], index: 1, kind: input, shape index: {}]   ;;  %s2597_s2 = inlined_call_operand.vmem [shape: s32[2,1,128], index: 2, kind: input, shape index: {}]   ;;  %s2598_s3 = inlined_call_operand.vmem [shape: s32[2,1,128], index: 3, kind: input, shape index: {}]   ;;  %s2599_s4 = inlined_call_operand.hbm [shape: f32[2,64,128], index: 4, kind: output, shape index: {}]  }
   0x1   :  { %10 = dma.hbm_to_smem %s2595_s0, 16, %s1858_s15, [#allocation2] }
   0x2   :  { %1804 = dma.done.wait [#allocation2], 16 }
   0x3   :  { %1805 = vsyncadd [#allocation2], 4294967280 }
   0x4   :  { %12 = sfence }
   0x5   :  { %13 = vsyncpa [#allocation5], 0 }
   0x6   :  { %15 = vsyncpa [#allocation5 + $0x1], 0 }
   0x7   :  { %16 = vsyncpa [#allocation6], 0 }
   0x8   :  { %18 = vsyncpa [#allocation6 + $0x1], 0  ;;  %s1896_s18 = smov 0   ;;  %s1898_s19 = smov 0  }
   0x9   :  { %s1900_s20 = smov 0   ;;  %s1902_s21 = smov 0  }
   0xa   :  { %s1904_s22 = smov 0   ;;  %s1906_s23 = smov 0  }
   0xb   :  { %s1908_s0 = smov 0   ;;  %s1910_s24 = smov 0  }
   0xc   :  { %s1912_s25 = smov 0   ;;  %s1914_s26 = smov 0  }
   0xd   :  { %s1916_s27 = smov 0  }
   0xe LB: > { %2616 = sst [smem:[#allocation11_spill]] %s1852_s26  ;;  %s1202_s28 = sadd.s32 4294967295, %s1856_s27   ;;  %s1856_s27 = sphi %s1916_s27, %s24_s27   ;;  %s1852_s26 = sphi %s1914_s26, %s2648_s26   ;;  %s1848_s25 = sphi %s1912_s25, %s2656_s25   ;;  %s1844_s24 = sphi %s1910_s24, %s2646_s24   ;;  %s1840_s0 = sphi %s1908_s0, %s2655_s0   ;;  %s1836_s23 = sphi %s1906_s23, %s2654_s23   ;;  %s1832_s22 = sphi %s1904_s22, %s2653_s22   ;;  %s1828_s21 = sphi %s1902_s21, %s2652_s21   ;;  %s1824_s20 = sphi %s1900_s20, %s2651_s20   ;;  %s1820_s19 = sphi %s1898_s19, %s2650_s19   ;;  %s1816_s18 = sphi %s1896_s18, %s2649_s18  }
   0xf   : > { %s1203_s29 = sadd.s32 4294967294, %s1856_s27   ;;  %s33_s30 = sadd.s32 1, %s1848_s25 }
  0x10   : > { %s36_s5 = sadd.s32 1, %s1852_s26  ;;  %p34_p0 = scmp.ge.s32.totalorder %s33_s30, 2 }
  0x11   : > { %s43_s6 = sadd.s32 1, %s1836_s23  ;;  %p50_p1 = scmp.ne.s32.totalorder %s1836_s23, %s1832_s22 }
  0x12   : > { %p51_p2 = scmp.eq.s32.totalorder %s1856_s27, 0  ;;  %s2658_s30 = smov (%p34_p0, %s33_s30), 0 }
  0x13   : > { %2617 = sst [smem:[#allocation12_spill]] %s2658_s30  ;;  %s2660_s5 = smov (!%p34_p0, %s36_s5), %s1852_s26 }
  0x14   : > { %p1960_p3 = por %p51_p2, %p50_p1  ;;  %p56_p4 = scmp.ne.s32.totalorder %s1832_s22, %s1828_s21 }
  0x15   : > { %p38_p5 = scmp.ge.s32.totalorder %s2660_s5, 2  ;;  %p57_p6 = scmp.eq.s32.totalorder %s1202_s28, 0 }
  0x16   : > { %s119_s8 = ssub.s32 %s1848_s25, %s2658_s30  ;;  %s123_s9 = sadd.s32 1, %s1824_s20 }
  0x17   : > { %s2662_s5 = smov (%p38_p5, %s2660_s5), 0  ;;  %p1970_p7 = por %p57_p6, %p56_p4 }
  0x18   : > { %2619 = sst [smem:[#allocation13_spill]] %s2662_s5  ;;  %p133_p8 = scmp.ne.s32.totalorder %s1824_s20, %s1820_s19 }
  0x19   : > { %s40_s11 = ssub.s32 %s1852_s26, %s2662_s5  ;;  %p134_p9 = scmp.eq.s32.totalorder %s1202_s28, 3 }
  0x1a   : > { %p41_p10 = scmp.eq.s32.totalorder %s40_s11, 0  ;;  %s120_s12 = sor.u32 %s119_s8, %s40_s11 }
  0x1b   : > { %p121_p11 = scmp.eq.s32.totalorder %s120_s12, 0  ;;  %p1978_p12 = por %p134_p9, %p133_p8 }
  0x1c   : > { %s1983_s14 = scalar_select %p41_p10, %s1836_s23, %s43_s6  }
  0x1d   : > { %s1986_s15 = scalar_select %p121_p11, %s1824_s20, %s123_s9  }
  0x1e   : > { %p139_p13 = scmp.ne.s32.totalorder %s1820_s19, %s1816_s18  ;;  %p140_p0 = scmp.eq.s32.totalorder %s1203_s29, 3 }
  0x1f   : > { %p1600_p1 = scmp.lt.s32.totalorder %s1856_s27, 4  ;;  %s160_s17 = sand.u32 1, %s1836_s23  }
  0x20   : > { %p1991_p2 = por %p140_p0, %p139_p13  ;;  %s1206_s21 = sshll.u32 %s160_s17, 7 }
  0x21   : > { %s1239_s28 = sshll.u32 %s1852_s26, 11  ;;  %s164_s5 = scalar_lea.vmem [#allocation4], %s1206_s21 }
  0x22   : > { %s170_s12 = scalar_lea.hbm %s2596_s1, %s1239_s28  ;;  %s171_s30 = sshll.u32 %s164_s5, 4  ;;  %s172_s30 = int_to_ptr.vmem [resolvable:$true] %s171_s30 }
  0x23   : > { %p2002_p4 = pnand %p1600_p1, %p1960_p3  ;;  %p1209_p5 = scmp.ge.s32.totalorder %s1856_s27, 1 }
  0x24   : > { %s161_s29 = scalar_lea.sflag [#allocation5], %s160_s17  ;;  %s1719_s9 = scalar_lea.vmem %s172_s30, 2048 }
  0x25   : > { %p1708_p6 = pneg %p2002_p4  ;;  %p1720_p8 = scmp.ne.s32.totalorder %s172_s30, %s1719_s9 }
  0x26   : > { %s1859_s26 = smov [#allocation4]  }
  0x27   : > { %p1722_p9 = pnand %p1720_p8, %p1708_p6  ;;  %s1724_s8 = sshll.u32 %s1859_s26, 4  ;;  %s1725_s8 = int_to_ptr.vmem [resolvable:$false] %s1724_s8 }
  0x28   : > { %s1726_s21 = scalar_lea.vmem %s1725_s8, 4096  ;;  %p1727_p11 = scmp.lt.s32.totalorder %s172_s30, %s1725_s8 }
  0x29   : > { %p1723_p10 = pneg %p1722_p9  ;;  %p1728_p13 = scmp.lt.s32.totalorder %s1726_s21, %s1719_s9 }
  0x2b   : > { %p1729_p0 = por %p1728_p13, %p1727_p11 }
  0x2d   : > { %p1730_p3 = pnand %p1729_p0, %p1723_p10 }
  0x2f   : > { %1733 = shalt.err (!%p1730_p3)
}
  0x30   : > { %s1860_s5 = smov 128   ;;  %s1861_s7 = smov 8  }
  0x31   : > { %1595 = dma.hbm_to_vmem [thread:$0]  (!%p2002_p4), %s170_s12, 2048, %s172_s30, %s161_s29, %s1860_s5, %s1860_s5, %s1861_s7  }
  0x32   : > { %p191_p1 = scmp.lt.s32.totalorder %s1856_s27, 5 }
  0x34   : > { %p192_p6 = pnand %p1209_p5, %p191_p1 }
  0x35   : > { %s197_s26 = sand.u32 (!%p192_p6), 1, %s1832_s22  }
  0x36   : > { %195 = sbr.rel (%p192_p6) target bundleno = 428 (0x1ac), region = 32  ;;  %s1210_s17 = sshll.u32 (!%p192_p6), %s197_s26, 7 }
  0x37   : > { %s198_s28 = scalar_lea.sflag (!%p192_p6), [#allocation5], %s197_s26  ;;  %s2015_s11 = scalar_lea.vmem (!%p192_p6), [#allocation4], %s1210_s17 }
  0x3b   : > { %1807 = dma.done.wait (%p1970_p7), %s198_s28, 2048  }
  0x3c   : > { %1809 = vsyncadd (%p1970_p7), %s198_s28, 4294965248  ;;  %s227_s30 = sand.u32 1, %s1820_s19   ;;  %p230_p4 = scmp.lt.s32.totalorder %s1844_s24, 1 }
  0x3d   : > { %s238_s12 = sld [smem:[#allocation3 + %s1844_s24]]  ;;  %s1211_s6 = sshll.u32 %s227_s30, 5 }
  0x3e   : > { %s2027_s29 = sshll.u32 %s1840_s0, 5  ;;  %s2040_s17 = scalar_lea.vmem [#allocation7], %s1211_s6 }
  0x3f   : > { %s2030_s9 = scalar_select %p230_p4, %s1844_s24, 1 }
  0x41   : > { %s232_s10 = scalar_lea.vmem %s2597_s2, %s2030_s9  ;;  %s235_s26 = scalar_lea.vmem %s2598_s3, %s2030_s9 }
  0x43   : > { %p1213_p7 = scmp.lt.s32.totalorder %s2027_s29, %s238_s12 }
  0x45   : > { %242 = sbr.rel (%p1213_p7) target bundleno = 77 (0x4d), region = 40 }
  0x4a   : > { %v1862_v0 = vmov 0.0  }
  0x4b   : > { %243 = vst [vmem:[%s2040_s17] sm:$0xff] %v1862_v0  ;;  %244 = vst [vmem:[%s2040_s17 + $0x8] sm:$0xff] %v1862_v0 }
  0x4c   : > { %245 = vst [vmem:[%s2040_s17 + $0x10] sm:$0xff] %v1862_v0  ;;  %246 = vst [vmem:[%s2040_s17 + $0x18] sm:$0xff] %v1862_v0 }
  0x4d PF: > { %p1214_p5 = scmp.ge.s32.totalorder %s2027_s29, %s238_s12 }
  0x4f   : > { %250 = sbr.rel (%p1214_p5) target bundleno = 402 (0x192), region = 44 }
  0x54   : > { %v306_v1 = vld [vmem:[%s2015_s11 + $0x78] sm:$0xff]  ;;  %v305_v2 = vld [vmem:[%s2015_s11 + $0x70] sm:$0xff]  ;;  %v304_v3 = vld [vmem:[%s2015_s11 + $0x68] sm:$0xff]  ;;  %v251_v44 = vlaneseq  ;;  %v2163_v55 = vstv %s2027_s29 }
  0x55   : > { %v2051_v4 = vand.u32 4294901760, %v306_v1  ;;  %v2053_v5 = vand.u32 4294901760, %v305_v2  ;;  %v2055_v6 = vand.u32 4294901760, %v304_v3  ;;  %v303_v7 = vld [vmem:[%s2015_s11 + $0x60] sm:$0xff]  ;;  %v302_v8 = vld [vmem:[%s2015_s11 + $0x58] sm:$0xff]  ;;  %v301_v9 = vld [vmem:[%s2015_s11 + $0x50] sm:$0xff] }
  0x56   : > { %v2060_v10 = vand.u32 4294901760, %v303_v7  ;;  %v2062_v11 = vand.u32 4294901760, %v302_v8  ;;  %v2064_v12 = vand.u32 4294901760, %v301_v9  ;;  %v300_v13 = vld [vmem:[%s2015_s11 + $0x48] sm:$0xff]  ;;  %v299_v14 = vld [vmem:[%s2015_s11 + $0x40] sm:$0xff]  ;;  %v298_v19 = vld [vmem:[%s2015_s11 + $0x38] sm:$0xff] }
  0x57   : > { %1360 = vmatprep.subr.mxu0 %v2051_v4  ;;  %v2070_v15 = vsub.f32 %v306_v1, %v2051_v4  ;;  %v2073_v16 = vsub.f32 %v305_v2, %v2053_v5  ;;  %v2075_v17 = vand.u32 4294901760, %v300_v13  ;;  %v2078_v18 = vsub.f32 %v304_v3, %v2055_v6  ;;  %v297_v26 = vld [vmem:[%s2015_s11 + $0x30] sm:$0xff]  ;;  %v296_v34 = vld [vmem:[%s2015_s11 + $0x28] sm:$0xff]  ;;  %v295_v42 = vld [vmem:[%s2015_s11 + $0x20] sm:$0xff] }
  0x58   : > { %1361 = vmatpush3.msra.mxu0 %v2051_v4  ;;  %v2083_v20 = vsub.f32 %v303_v7, %v2060_v10  ;;  %v2086_v21 = vsub.f32 %v302_v8, %v2062_v11  ;;  %v2098_v25 = vand.u32 4294901760, %v299_v14  ;;  %v2105_v28 = vand.u32 4294901760, %v298_v19  ;;  %v294_v50 = vld [vmem:[%s2015_s11 + $0x18] sm:$0xff]  ;;  %v293_v57 = vld [vmem:[%s2015_s11 + $0x10] sm:$0xff]  ;;  %v2185_v63 = vld [vmem:[%s232_s10] ss:$0 sm:$0xff] }
  0x59   : > { %1362 = vmatprep.subr.mxu0 %v2053_v5  ;;  %v2090_v22 = vand.u32 4294901760, %v2070_v15  ;;  %v2093_v23 = vand.u32 4294901760, %v2073_v16  ;;  %v2096_v24 = vand.u32 4294901760, %v2078_v18  ;;  %v2111_v30 = vsub.f32 %v301_v9, %v2064_v12  ;;  %v2192_v0 = vld [vmem:[%s235_s26] ss:$0 sm:$0xff]  ;;  %v292_v8 = vld [vmem:[%s2015_s11 + $0x8] sm:$0xff] }
  0x5a   : > { %1363 = vmatpush3.msra.mxu0 %v2053_v5  ;;  %v2103_v27 = vand.u32 4294901760, %v2083_v20  ;;  %v2108_v29 = vand.u32 4294901760, %v2086_v21  ;;  %v2122_v35 = vsub.f32 %v300_v13, %v2075_v17  ;;  %v2125_v36 = vand.u32 4294901760, %v297_v26 }
  0x5b   : > { %1364 = vmatprep.subr.mxu0 %v2055_v6  ;;  %v432_v31 = vsub.f32 %v2070_v15, %v2090_v22  ;;  %v439_v32 = vsub.f32 %v2073_v16, %v2093_v23  ;;  %v446_v33 = vsub.f32 %v2078_v18, %v2096_v24  ;;  %v2131_v40 = vand.u32 4294901760, %v2111_v30 }
  0x5c   : > { %1365 = vmatpush3.msra.mxu0 %v2055_v6  ;;  %v453_v39 = vsub.f32 %v2083_v20, %v2103_v27  ;;  %v2134_v41 = vand.u32 4294901760, %v296_v34  ;;  %v2138_v43 = vsub.f32 %v299_v14, %v2098_v25  ;;  %v460_v46 = vsub.f32 %v2086_v21, %v2108_v29 }
  0x5d   : > { %1366 = vmatprep.subr.mxu0 %v2060_v10  ;;  %v433_v37 = vand.u32 4294901760, %v432_v31  ;;  %v440_v38 = vand.u32 4294901760, %v439_v32  ;;  %v447_v45 = vand.u32 4294901760, %v446_v33  ;;  %v2144_v47 = vand.u32 4294901760, %v2122_v35  ;;  %v291_v32 = vld [vmem:[%s2015_s11] sm:$0xff] }
  0x5e   : > { %1367 = vmatpush3.msra.mxu0 %v2060_v10  ;;  %v2147_v48 = vsub.f32 %v298_v19, %v2105_v28  ;;  %v2151_v49 = vand.u32 4294901760, %v2138_v43  ;;  %v2155_v51 = vsub.f32 %v297_v26, %v2125_v36  ;;  %v454_v52 = vand.u32 4294901760, %v453_v39 }
  0x5f   : > { %1368 = vmatprep.subr.mxu0 %v2062_v11  ;;  %1398 = vmatprep.subr.mxu1 %v433_v37  ;;  %v467_v53 = vsub.f32 %v2111_v30, %v2131_v40  ;;  %v2160_v54 = vand.u32 4294901760, %v295_v42  ;;  %v2170_v58 = vshrl.u32 %v251_v44, 7  ;;  %v461_v59 = vand.u32 4294901760, %v460_v46 }
  0x60   : > { %1369 = vmatpush3.msra.mxu0 %v2062_v11  ;;  %1399 = vmatpush3.msra.mxu1 %v433_v37  ;;  %v2167_v56 = vand.u32 4294901760, %v2147_v48  ;;  %v474_v60 = vsub.f32 %v2122_v35, %v2144_v47  ;;  %v2175_v61 = vand.u32 4294901760, %v294_v50  ;;  %v2178_v62 = vsub.f32 %v296_v34, %v2134_v41 }
  0x61   : > { %1370 = vmatprep.subr.mxu0 %v2064_v12  ;;  %1400 = vmatprep.subr.mxu1 %v440_v38  ;;  %v481_v1 = vsub.f32 %v2138_v43, %v2151_v49  ;;  %v2198_v2 = vand.u32 4294901760, %v2155_v51  ;;  %v257_v3 = vadd.s32 %v2163_v55, %v2170_v58  ;;  %v468_v7 = vand.u32 4294901760, %v467_v53 }
  0x62   : > { %1371 = vmatpush3.msra.mxu0 %v2064_v12  ;;  %1401 = vmatpush3.msra.mxu1 %v440_v38  ;;  %v2205_v9 = vsub.f32 %v295_v42, %v2160_v54  ;;  %v253_v13 = vadd.s32 8, %v2170_v58  ;;  %v488_v14 = vsub.f32 %v2147_v48, %v2167_v56  ;;  %v2211_v19 = vand.u32 4294901760, %v293_v57 }
  0x63   : > { %1372 = vmatprep.subr.mxu0 %v2075_v17  ;;  %1402 = vmatprep.subr.mxu1 %v447_v45  ;;  %2624 = vst [vmem:[#allocation14_spill] sm:$0xff] %v2198_v2  ;;  %vm267_vm0 = vcmp.ge.s32.totalorder %v257_v3, %v2192_v0  ;;  %vm275_vm1 = vcmp.lt.s32.totalorder %v257_v3, %v2185_v63  ;;  %v475_v26 = vand.u32 4294901760, %v474_v60  ;;  %v2217_v31 = vand.u32 4294901760, %v2178_v62 }
  0x64   : > { %1373 = vmatpush3.msra.mxu0 %v2075_v17  ;;  %1403 = vmatpush3.msra.mxu1 %v447_v45  ;;  %vm2220_vm2 = vmand %vm267_vm0, %vm275_vm1  ;;  %v2225_v34 = vsub.f32 %v294_v50, %v2175_v61  ;;  %v258_v37 = vadd.s32 %v2163_v55, %v253_v13  ;;  %v482_v38 = vand.u32 4294901760, %v481_v1  ;;  %v495_v39 = vsub.f32 %v2155_v51, %v2198_v2 }
  0x65   : > { %1374 = vmatprep.subr.mxu0 %v2098_v25  ;;  %1404 = vmatprep.subr.mxu1 %v454_v52  ;;  %2625 = vst [vmem:[#allocation15_spill] sm:$0xff] %v2217_v31  ;;  %v2231_v42 = vand.u32 4294901760, %v292_v8  ;;  %v2603_v44 = vmov 0.0   ;;  %v2238_v46 = vand.u32 4294901760, %v2205_v9  ;;  %v2245_v53 = vand.u32 4294901760, %v291_v32 }
  0x66   : > { %1375 = vmatpush3.msra.mxu0 %v2098_v25  ;;  %1405 = vmatpush3.msra.mxu1 %v454_v52  ;;  %v1217_v45 = vsel %vm2220_vm2, 1.0, %v2603_v44  ;;  %vm268_vm3 = vcmp.ge.s32.totalorder %v258_v37, %v2192_v0  ;;  %vm276_vm4 = vcmp.lt.s32.totalorder %v258_v37, %v2185_v63  ;;  %v489_v52 = vand.u32 4294901760, %v488_v14 }
  0x67   : > { %1376 = vmatprep.subr.mxu0 %v2105_v28  ;;  %1406 = vmatprep.subr.mxu1 %v461_v59  ;;  %2628 = vst [vmem:[#allocation16_spill] sm:$0xff] %v2238_v46  ;;  %v2240_v50 = vsub.f32 %v1217_v45, %v1217_v45  ;;  %vm2247_vm5 = vmand %vm268_vm3, %vm276_vm4  ;;  %v2252_v60 = vsub.f32 %v293_v57, %v2211_v19  ;;  %v496_v37 = vand.u32 4294901760, %v495_v39  ;;  %v255_v2 = vadd.s32 24, %v2170_v58 }
  0x68   : > { %1377 = vmatpush3.msra.mxu0 %v2105_v28  ;;  %1407 = vmatpush3.msra.mxu1 %v461_v59  ;;  %v502_v1 = vsub.f32 %v2178_v62, %v2217_v31  ;;  %v1218_v13 = vsel %vm2247_vm5, 1.0, %v2603_v44  ;;  %v2268_v14 = vsub.f32 %v292_v8, %v2231_v42  ;;  %v509_v45 = vsub.f32 %v2205_v9, %v2238_v46 }
  0x69   : > { %1378 = vmatprep.subr.mxu0 %v2125_v36  ;;  %1408 = vmatprep.subr.mxu1 %v468_v7  ;;  %v2265_v57 = vsub.f32 %v1218_v13, %v1218_v13  ;;  %v2276_v3 = vand.u32 4294901760, %v2252_v60  ;;  %v2633_v39 = vand.u32 4294901760, %v2240_v50  ;;  %v254_v31 = vadd.s32 16, %v2170_v58 }
  0x6a   : > { %1379 = vmatpush3.msra.mxu0 %v2125_v36  ;;  %1409 = vmatpush3.msra.mxu1 %v468_v7  ;;  %v2259_v7 = vand.u32 4294901760, %v2225_v34  ;;  %v503_v8 = vand.u32 4294901760, %v502_v1  ;;  %v510_v1 = vand.u32 4294901760, %v509_v45  ;;  %v260_v58 = vadd.s32 %v2163_v55, %v255_v2 }
  0x6b   : > { %1380 = vmatprep.subr.mxu0 %v2134_v41  ;;  %1410 = vmatprep.subr.mxu1 %v475_v26  ;;  %v2609_v44 = vand.u32 4294901760, %v2265_v57  ;;  %2632 = vst [vmem:[#allocation18_spill] sm:$0xff] %v2276_v3  ;;  %v391_v13 = vsub.f32 %v2240_v50, %v2633_v39  ;;  %v523_v39 = vsub.f32 %v2252_v60, %v2276_v3 }
  0x6c   : > { %2631 = vst [vmem:[#allocation17_spill] sm:$0xff] %v2259_v7  ;;  %1381 = vmatpush3.msra.mxu0 %v2134_v41  ;;  %1411 = vmatpush3.msra.mxu1 %v475_v26  ;;  %v2279_v26 = vsub.f32 %v291_v32, %v2245_v53  ;;  %v516_v46 = vsub.f32 %v2225_v34, %v2259_v7  ;;  %v2292_v32 = vand.u32 4294901760, %v2268_v14 }
  0x6d   : > { %1382 = vmatprep.subr.mxu0 %v2160_v54  ;;  %1412 = vmatprep.subr.mxu1 %v482_v38  ;;  %v524_v3 = vand.u32 4294901760, %v523_v39  ;;  %vm270_vm8 = vcmp.ge.s32.totalorder %v260_v58, %v2192_v0  ;;  %vm278_vm9 = vcmp.lt.s32.totalorder %v260_v58, %v2185_v63 }
  0x6e   : > { %1383 = vmatpush3.msra.mxu0 %v2160_v54  ;;  %1413 = vmatpush3.msra.mxu1 %v482_v38  ;;  %v401_v38 = vsub.f32 %v2265_v57, %v2609_v44  ;;  %v2299_v7 = vand.u32 4294901760, %v2279_v26  ;;  %v517_v44 = vand.u32 4294901760, %v516_v46  ;;  %vm2331_vm11 = vmand %vm270_vm8, %vm278_vm9 }
  0x6f   : > { %1384 = vmatprep.subr.mxu0 %v2175_v61  ;;  %1414 = vmatprep.subr.mxu1 %v489_v52 }
  0x70   : > { %1385 = vmatpush3.msra.mxu0 %v2175_v61  ;;  %1415 = vmatpush3.msra.mxu1 %v489_v52  ;;  %v392_v52 = vand.u32 4294901760, %v391_v13  ;;  %v402_v45 = vand.u32 4294901760, %v401_v38  ;;  %v537_v46 = vsub.f32 %v2279_v26, %v2299_v7 }
  0x71   : > { %1386 = vmatprep.subr.mxu0 %v2211_v19  ;;  %1416 = vmatprep.subr.mxu1 %v496_v37 }
  0x72   : > { %1387 = vmatpush3.msra.mxu0 %v2211_v19  ;;  %1417 = vmatpush3.msra.mxu1 %v496_v37  ;;  %v530_v37 = vsub.f32 %v2268_v14, %v2292_v32  ;;  %v538_v38 = vand.u32 4294901760, %v537_v46 }
  0x73   : > { %1388 = vmatprep.subr.mxu0 %v2231_v42  ;;  %1418 = vmatprep.subr.mxu1 %v503_v8 }
  0x74   : > { %1389 = vmatpush3.msra.mxu0 %v2231_v42  ;;  %1419 = vmatpush3.msra.mxu1 %v503_v8  ;;  %v259_v8 = vadd.s32 %v2163_v55, %v254_v31  ;;  %v531_v13 = vand.u32 4294901760, %v530_v37 }
  0x75   : > { %1390 = vmatprep.subr.mxu0 %v2245_v53  ;;  %1420 = vmatprep.subr.mxu1 %v510_v1 }
  0x76   : > { %1391 = vmatpush3.msra.mxu0 %v2245_v53  ;;  %1421 = vmatpush3.msra.mxu1 %v510_v1  ;;  %vm269_vm6 = vcmp.ge.s32.totalorder %v259_v8, %v2192_v0  ;;  %vm277_vm7 = vcmp.lt.s32.totalorder %v259_v8, %v2185_v63 }
  0x77   : > { %1392 = vmatprep.mubr.f32.mxu0 %v392_v52  ;;  %1422 = vmatprep.subr.mxu1 %v517_v44  ;;  %vm2324_vm10 = vmand %vm269_vm6, %vm277_vm7 }
  0x78   : > { %1436 = vmatprep.subr.mxu0 %v2070_v15  ;;  %1393 = vmatmul.mubr.f32.vlgmr.msra.gmra.mxu0 %v402_v45 }
  0x79   : > { %1423 = vmatpush3.msra.mxu1 %v517_v44  ;;  %1437 = vmatpush3.msra.mxu0 %v2070_v15 }
  0x7a   : > { %1424 = vmatprep.subr.mxu1 %v524_v3  ;;  %1438 = vmatprep.subr.mxu0 %v2073_v16 }
  0x7b   : > { %1425 = vmatpush3.msra.mxu1 %v524_v3  ;;  %1439 = vmatpush3.msra.mxu0 %v2073_v16  ;;  %v1864_v16 = vmov 1.0  }
  0x7c   : > { %1426 = vmatprep.subr.mxu1 %v531_v13  ;;  %1440 = vmatprep.subr.mxu0 %v2078_v18 }
  0x7d   : > { %1427 = vmatpush3.msra.mxu1 %v531_v13  ;;  %1441 = vmatpush3.msra.mxu0 %v2078_v18  ;;  %v2638_v18 = vmov 0.0  }
  0x7e   : > { %1428 = vmatprep.subr.mxu1 %v538_v38  ;;  %1442 = vmatprep.subr.mxu0 %v2083_v20  ;;  %v1219_v63 = vsel %vm2324_vm10, 1.0, %v2638_v18 }
  0x7f   : > { %1429 = vmatpush3.msra.mxu1 %v538_v38  ;;  %1430 = vmatprep.mubr.msk.f32.mxu1 %vm2220_vm2, %v1864_v16  ;;  %v2353_v0 = vsub.f32 %v1219_v63, %v1219_v63 }
  0x80   : > { %1443 = vmatpush3.msra.mxu0 %v2083_v20  ;;  %1431 = vmatmul.mubr.msk.f32.vlgmr.msra.gmra.mxu1 %vm2247_vm5, %v1864_v16  ;;  %v1220_v20 = vsel %vm2331_vm11, 1.0, %v2638_v18 }
  0x81   : > { %1444 = vmatprep.subr.mxu0 %v2086_v21  ;;  %1474 = vmatprep.subr.mxu1 %v2051_v4 }
  0x82   : > { %1445 = vmatpush3.msra.mxu0 %v2086_v21  ;;  %1475 = vmatpush3.msra.mxu1 %v2051_v4  ;;  %v2357_v21 = vsub.f32 %v1220_v20, %v1220_v20 }
  0x83   : > { %1446 = vmatprep.subr.mxu0 %v2111_v30  ;;  %1476 = vmatprep.subr.mxu1 %v2053_v5 }
  0x84   : > { %1447 = vmatpush3.msra.mxu0 %v2111_v30  ;;  %1477 = vmatpush3.msra.mxu1 %v2053_v5  ;;  %v410_v30 = vand.u32 4294901760, %v2353_v0  ;;  %v420_v2 = vand.u32 4294901760, %v2357_v21 }
  0x85   : > { %1448 = vmatprep.subr.mxu0 %v2122_v35  ;;  %1478 = vmatprep.subr.mxu1 %v2055_v6 }
  0x86   : > { %1449 = vmatpush3.msra.mxu0 %v2122_v35  ;;  %1479 = vmatpush3.msra.mxu1 %v2055_v6  ;;  %v411_v35 = vsub.f32 %v2353_v0, %v410_v30 }
  0x87   : > { %1450 = vmatprep.subr.mxu0 %v2138_v43  ;;  %1480 = vmatprep.subr.mxu1 %v2060_v10 }
  0x88   : > { %1451 = vmatpush3.msra.mxu0 %v2138_v43  ;;  %1481 = vmatpush3.msra.mxu1 %v2060_v10  ;;  %v421_v43 = vsub.f32 %v2357_v21, %v420_v2 }
  0x89   : > { %1452 = vmatprep.subr.mxu0 %v2147_v48  ;;  %1482 = vmatprep.subr.mxu1 %v2062_v11 }
  0x8a   : > { %1453 = vmatpush3.msra.mxu0 %v2147_v48  ;;  %1483 = vmatpush3.msra.mxu1 %v2062_v11  ;;  %v412_v48 = vand.u32 4294901760, %v411_v35 }
  0x8b   : > { %1454 = vmatprep.subr.mxu0 %v2155_v51  ;;  %1484 = vmatprep.subr.mxu1 %v2064_v12 }
  0x8c   : > { %1455 = vmatpush3.msra.mxu0 %v2155_v51  ;;  %1485 = vmatpush3.msra.mxu1 %v2064_v12  ;;  %v422_v51 = vand.u32 4294901760, %v421_v43 }
  0x8d   : > { %1456 = vmatprep.subr.mxu0 %v2178_v62  ;;  %1486 = vmatprep.subr.mxu1 %v2075_v17 }
  0x8e   : > { %1457 = vmatpush3.msra.mxu0 %v2178_v62  ;;  %1487 = vmatpush3.msra.mxu1 %v2075_v17 }
  0x8f   : > { %1458 = vmatprep.subr.mxu0 %v2205_v9  ;;  %1488 = vmatprep.subr.mxu1 %v2098_v25 }
  0x90   : > { %1459 = vmatpush3.msra.mxu0 %v2205_v9  ;;  %1489 = vmatpush3.msra.mxu1 %v2098_v25 }
  0x91   : > { %1460 = vmatprep.subr.mxu0 %v2225_v34  ;;  %1490 = vmatprep.subr.mxu1 %v2105_v28 }
  0x92   : > { %1461 = vmatpush3.msra.mxu0 %v2225_v34  ;;  %1491 = vmatpush3.msra.mxu1 %v2105_v28 }
  0x93   : > { %1462 = vmatprep.subr.mxu0 %v2252_v60  ;;  %1492 = vmatprep.subr.mxu1 %v2125_v36 }
  0x94   : > { %1395 = vmatprep.mubr.f32.mxu0 %v412_v48  ;;  %1463 = vmatpush3.msra.mxu0 %v2252_v60 }
  0x95   : > { %1493 = vmatpush3.msra.mxu1 %v2125_v36  ;;  %1396 = vmatmul.mubr.f32.gmra.mxu0 %v422_v51 }
  0x96   : > { %1464 = vmatprep.subr.mxu0 %v2268_v14  ;;  %1494 = vmatprep.subr.mxu1 %v2134_v41 }
  0x97   : > { %1465 = vmatpush3.msra.mxu0 %v2268_v14  ;;  %1495 = vmatpush3.msra.mxu1 %v2134_v41 }
  0x98   : > { %1466 = vmatprep.subr.mxu0 %v2279_v26  ;;  %1496 = vmatprep.subr.mxu1 %v2160_v54 }
  0x99   : > { %1467 = vmatpush3.msra.mxu0 %v2279_v26  ;;  %1468 = vmatprep.mubr.f32.mxu0 %v2240_v50 }
  0x9a   : > { %1497 = vmatpush3.msra.mxu1 %v2160_v54  ;;  %1433 = vmatprep.mubr.msk.f32.mxu1 %vm2324_vm10, %v1864_v16 }
  0x9b   : > { %1469 = vmatmul.mubr.f32.vlgmr.msra.gmra.mxu0 %v2265_v57  ;;  %1498 = vmatprep.subr.mxu1 %v2175_v61 }
  0x9c   : > { %1512 = vmatprep.subr.mxu0 %v2090_v22  ;;  %1434 = vmatmul.mubr.msk.f32.gmra.mxu1 %vm2331_vm11, %v1864_v16 }
  0x9d   : > { %1499 = vmatpush3.msra.mxu1 %v2175_v61  ;;  %1513 = vmatpush3.msra.mxu0 %v2090_v22  ;;  %v2639_v22 = vand.u32 4294901760, %v2240_v50 }
  0x9e   : > { %1500 = vmatprep.subr.mxu1 %v2211_v19  ;;  %1514 = vmatprep.subr.mxu0 %v2093_v23 }
  0x9f   : > { %1471 = vmatprep.mubr.f32.mxu0 %v2353_v0  ;;  %1501 = vmatpush3.msra.mxu1 %v2211_v19 }
  0xa0   : > { %1515 = vmatpush3.msra.mxu0 %v2093_v23  ;;  %1502 = vmatprep.subr.mxu1 %v2231_v42  ;;  %v2640_v23 = vand.u32 4294901760, %v2265_v57 }
  0xa1   : > { %1472 = vmatmul.mubr.f32.gmra.mxu0 %v2357_v21  ;;  %1516 = vmatprep.subr.mxu0 %v2096_v24 }
  0xa2   : > { %1503 = vmatpush3.msra.mxu1 %v2231_v42  ;;  %1517 = vmatpush3.msra.mxu0 %v2096_v24 }
  0xa3   : > { %1504 = vmatprep.subr.mxu1 %v2245_v53  ;;  %1518 = vmatprep.subr.mxu0 %v2103_v27 }
  0xa4   : > { %1505 = vmatpush3.msra.mxu1 %v2245_v53  ;;  %1506 = vmatprep.mubr.f32.mxu1 %v2639_v22 }
  0xa5   : > { %1519 = vmatpush3.msra.mxu0 %v2103_v27  ;;  %1507 = vmatmul.mubr.f32.vlgmr.msra.gmra.mxu1 %v2640_v23 }
  0xa6   : > { %1520 = vmatprep.subr.mxu0 %v2108_v29  ;;  %1550 = vmatprep.subr.mxu1 %v2051_v4 }
  0xa7   : > { %1521 = vmatpush3.msra.mxu0 %v2108_v29  ;;  %1551 = vmatpush3.msra.mxu1 %v2051_v4  ;;  %v2641_v4 = vld [vmem:[#allocation14_spill] sm:$0xff] }
  0xa8   : > { %1522 = vmatprep.subr.mxu0 %v2131_v40  ;;  %1552 = vmatprep.subr.mxu1 %v2053_v5 }
  0xa9   : > { %1509 = vmatprep.mubr.f32.mxu1 %v410_v30  ;;  %1523 = vmatpush3.msra.mxu0 %v2131_v40 }
  0xaa   : > { %1553 = vmatpush3.msra.mxu1 %v2053_v5  ;;  %1524 = vmatprep.subr.mxu0 %v2144_v47  ;;  %v2642_v5 = vld [vmem:[#allocation15_spill] sm:$0xff] }
  0xab   : > { %1510 = vmatmul.mubr.f32.gmra.mxu1 %v420_v2  ;;  %1554 = vmatprep.subr.mxu1 %v2055_v6 }
  0xac   : > { %1525 = vmatpush3.msra.mxu0 %v2144_v47  ;;  %1555 = vmatpush3.msra.mxu1 %v2055_v6  ;;  %v2643_v6 = vld [vmem:[#allocation16_spill] sm:$0xff] }
  0xad   : > { %1526 = vmatprep.subr.mxu0 %v2151_v49  ;;  %1556 = vmatprep.subr.mxu1 %v2060_v10 }
  0xae   : > { %1527 = vmatpush3.msra.mxu0 %v2151_v49  ;;  %1557 = vmatpush3.msra.mxu1 %v2060_v10  ;;  %v2644_v10 = vld [vmem:[#allocation17_spill] sm:$0xff] }
  0xaf   : > { %1528 = vmatprep.subr.mxu0 %v2167_v56  ;;  %1558 = vmatprep.subr.mxu1 %v2062_v11 }
  0xb0   : > { %1529 = vmatpush3.msra.mxu0 %v2167_v56  ;;  %1559 = vmatpush3.msra.mxu1 %v2062_v11  ;;  %v2645_v11 = vld [vmem:[#allocation18_spill] sm:$0xff] }
  0xb1   : > { %1530 = vmatprep.subr.mxu0 %v2641_v4  ;;  %1560 = vmatprep.subr.mxu1 %v2064_v12 }
  0xb2   : > { %1531 = vmatpush3.msra.mxu0 %v2641_v4  ;;  %1561 = vmatpush3.msra.mxu1 %v2064_v12 }
  0xb3   : > { %1532 = vmatprep.subr.mxu0 %v2642_v5  ;;  %1562 = vmatprep.subr.mxu1 %v2075_v17 }
  0xb4   : > { %1533 = vmatpush3.msra.mxu0 %v2642_v5  ;;  %1563 = vmatpush3.msra.mxu1 %v2075_v17 }
  0xb5   : > { %1534 = vmatprep.subr.mxu0 %v2643_v6  ;;  %1564 = vmatprep.subr.mxu1 %v2098_v25 }
  0xb6   : > { %1535 = vmatpush3.msra.mxu0 %v2643_v6  ;;  %1565 = vmatpush3.msra.mxu1 %v2098_v25 }
  0xb7   : > { %1536 = vmatprep.subr.mxu0 %v2644_v10  ;;  %1566 = vmatprep.subr.mxu1 %v2105_v28 }
  0xb8   : > { %1537 = vmatpush3.msra.mxu0 %v2644_v10  ;;  %1567 = vmatpush3.msra.mxu1 %v2105_v28 }
  0xb9   : > { %1538 = vmatprep.subr.mxu0 %v2645_v11  ;;  %1568 = vmatprep.subr.mxu1 %v2125_v36 }
  0xba   : > { %1539 = vmatpush3.msra.mxu0 %v2645_v11  ;;  %1569 = vmatpush3.msra.mxu1 %v2125_v36 }
  0xbb   : > { %1540 = vmatprep.subr.mxu0 %v2292_v32  ;;  %1570 = vmatprep.subr.mxu1 %v2134_v41 }
  0xbc   : > { %1541 = vmatpush3.msra.mxu0 %v2292_v32  ;;  %1571 = vmatpush3.msra.mxu1 %v2134_v41 }
  0xbd   : > { %1542 = vmatprep.subr.mxu0 %v2299_v7  ;;  %1572 = vmatprep.subr.mxu1 %v2160_v54 }
  0xbe   : > { %1543 = vmatpush3.msra.mxu0 %v2299_v7  ;;  %1544 = vmatprep.mubr.msk.f32.mxu0 %vm2220_vm2, %v1864_v16 }
  0xbf   : > { %1573 = vmatpush3.msra.mxu1 %v2160_v54  ;;  %1545 = vmatmul.mubr.msk.f32.vlgmr.msra.gmra.mxu0 %vm2247_vm5, %v1864_v16 }
  0xc0   : > { %1574 = vmatprep.subr.mxu1 %v2175_v61  ;;  %1547 = vmatprep.mubr.msk.f32.mxu0 %vm2324_vm10, %v1864_v16 }
  0xc1   : > { %1575 = vmatpush3.msra.mxu1 %v2175_v61  ;;  %1582 = vmatprep.mubr.msk.f32.mxu1 %vm2220_vm2, %v1864_v16 }
  0xc2   : > { %1576 = vmatprep.subr.mxu1 %v2211_v19 }
  0xc3   : > { %1577 = vmatpush3.msra.mxu1 %v2211_v19  ;;  %1548 = vmatmul.mubr.msk.f32.gmra.mxu0 %vm2331_vm11, %v1864_v16 }
  0xc4   : > { %1578 = vmatprep.subr.mxu1 %v2231_v42 }
  0xc5   : > { %1579 = vmatpush3.msra.mxu1 %v2231_v42 }
  0xc6   : > { %1580 = vmatprep.subr.mxu1 %v2245_v53 }
  0xc7   : > { %1581 = vmatpush3.msra.mxu1 %v2245_v53 }
  0xc8   : > { %1583 = vmatmul.mubr.msk.f32.vlgmr.msra.gmra.mxu1 %vm2247_vm5, %v1864_v16 }
  0xc9   : > { %1585 = vmatprep.mubr.msk.f32.mxu1 %vm2324_vm10, %v1864_v16 }
  0xcc   : > { %1586 = vmatmul.mubr.msk.f32.gmra.mxu1 %vm2331_vm11, %v1864_v16 }
 0x138   : > { %v1394_v12 = vpop.f32.mrf.mxu0 }
 0x13a   : > { %v394_v17 = vpop.f32.mrf.mxu0 }
 0x140   : > { %v1432_v27 = vpop.f32.mrf.mxu1 }
 0x141   : > { %v582_v62 = vadd.f32 %v1432_v27, %v1394_v12 }
 0x142   : > { %v575_v29 = vpop.f32.mrf.mxu1 }
 0x143   : > { %v576_v31 = vadd.f32 %v575_v29, %v394_v17 }
 0x155   : > { %v1397_v24 = vpop.f32.mrf.mxu0 }
 0x157   : > { %v414_v25 = vpop.f32.mrf.mxu0 }
 0x15b   : > { %v1470_v28 = vpop.f32.mrf.mxu0 }
 0x15c   : > { %v1435_v36 = vpop.f32.mrf.mxu1  ;;  %v705_v33 = vadd.f32 %v1470_v28, %v582_v62 }
 0x15d   : > { %v697_v40 = vpop.f32.mrf.mxu0  ;;  %v594_v34 = vadd.f32 %v1435_v36, %v1397_v24 }
 0x15e   : > { %v587_v41 = vpop.f32.mrf.mxu1  ;;  %v698_v42 = vadd.f32 %v697_v40, %v576_v31 }
 0x15f   : > { %v588_v44 = vadd.f32 %v587_v41, %v414_v25 }
 0x161   : > { %v1473_v47 = vpop.f32.mrf.mxu0 }
 0x162   : > { %v719_v60 = vadd.f32 %v1473_v47, %v594_v34 }
 0x163   : > { %v711_v54 = vpop.f32.mrf.mxu0 }
 0x164   : > { %v712_v14 = vadd.f32 %v711_v54, %v588_v44 }
 0x165   : > { %v1508_v49 = vpop.f32.mrf.mxu1 }
 0x166   : > { %v816_v50 = vadd.f32 %v1508_v49, %v705_v33 }
 0x167   : > { %v807_v56 = vpop.f32.mrf.mxu1 }
 0x168   : > { %v808_v3 = vadd.f32 %v807_v56, %v698_v42 }
 0x16b   : > { %v1511_v9 = vpop.f32.mrf.mxu1 }
 0x16c   : > { %v832_v26 = vadd.f32 %v1511_v9, %v719_v60 }
 0x16d   : > { %v823_v53 = vpop.f32.mrf.mxu1 }
 0x16e   : > { %v824_v45 = vadd.f32 %v823_v53, %v712_v14 }
 0x17f   : > { %v1546_v61 = vpop.f32.mrf.mxu0 }
 0x180   : > { %v957_v7 = vadd.f32 %v1546_v61, %v816_v50 }
 0x181   : > { %v950_v19 = vpop.f32.mrf.mxu0 }
 0x182   : > { %v951_v32 = vadd.f32 %v950_v19, %v808_v3 }
 0x183   : > { %v1549_v59 = vpop.f32.mrf.mxu0 }
 0x184   : > { %v969_v37 = vadd.f32 %v1549_v59, %v832_v26 }
 0x185   : > { %v962_v39 = vpop.f32.mrf.mxu0 }
 0x186   : > { %v963_v13 = vadd.f32 %v962_v39, %v824_v45 }
 0x188   : > { %v1584_v57 = vpop.f32.mrf.mxu1 }
 0x189   : > { %v1062_v1 = vadd.f32 %v1584_v57, %v957_v7 }
 0x18a   : > { %v1055_v52 = vpop.f32.mrf.mxu1 }
 0x18b   : > { %1078 = vst [vmem:[%s2040_s17 + $0x8] sm:$0xff] %v1062_v1  ;;  %v1056_v46 = vadd.f32 %v1055_v52, %v951_v32 }
 0x18c   : > { %v1587_v8 = vpop.f32.mrf.mxu1 }
 0x18d   : > { %1077 = vst [vmem:[%s2040_s17] sm:$0xff] %v1056_v46  ;;  %v1074_v58 = vadd.f32 %v1587_v8, %v969_v37 }
 0x18e   : > { %v1067_v38 = vpop.f32.mrf.mxu1 }
 0x18f   : > { %1080 = vst [vmem:[%s2040_s17 + $0x18] sm:$0xff] %v1074_v58  ;;  %v1068_v15 = vadd.f32 %v1067_v38, %v963_v13 }
 0x191   : > { %1079 = vst [vmem:[%s2040_s17 + $0x10] sm:$0xff] %v1068_v15 }
 0x192 PF: > { %s1234_s11 = sshll.u32 %s1840_s0, 2  ;;  %s1235_s9 = sshll.u32 %s1844_s24, 3 }
 0x193   : > { %s1097_s8 = sshll.u32 %s2040_s17, 4  ;;  %s1094_s21 = sadd.s32 %s1235_s9, %s1234_s11  ;;  %s2526_s8 = int_to_ptr.vmem [resolvable:$true] %s1097_s8 }
 0x194   : > { %s1236_s10 = sshll.u32 %s1094_s21, 7  ;;  %s2535_s28 = scalar_lea.sflag [#allocation6], %s227_s30 }
 0x195   : > { %s2531_s26 = scalar_lea.hbm %s2599_s4, %s1236_s10  ;;  %s1734_s12 = scalar_lea.vmem %s2526_s8, 512 }
 0x196   : > { %p1735_p8 = scmp.ne.s32.totalorder %s2526_s8, %s1734_s12  ;;  %s1865_s0 = smov [#allocation7]  }
 0x197   : > { %s1738_s24 = sshll.u32 %s1865_s0, 4  ;;  %s1739_s24 = int_to_ptr.vmem [resolvable:$false] %s1738_s24 }
 0x198   : > { %p1736_p9 = pnand %p1735_p8, %p1978_p12  ;;  %s1740_s17 = scalar_lea.vmem %s1739_s24, 1024 }
 0x199   : > { %p1741_p11 = scmp.lt.s32.totalorder %s2526_s8, %s1739_s24  ;;  %p1742_p13 = scmp.lt.s32.totalorder %s1740_s17, %s1734_s12 }
 0x19a   : > { %p1737_p10 = pneg %p1736_p9 }
 0x19b   : > { %p1743_p0 = por %p1742_p13, %p1741_p11 }
 0x19d   : > { %p1744_p3 = pnand %p1743_p0, %p1737_p10 }
 0x19f   : > { %1747 = shalt.err (!%p1744_p3)
}
 0x1a0   : > { %s1748_s30 = scalar_lea.hbm %s2531_s26, 512  ;;  %s1752_s11 = scalar_lea.hbm %s2599_s4, 2048 }
 0x1a1   : > { %p1749_p1 = scmp.ne.s32.totalorder %s2531_s26, %s1748_s30  ;;  %p1753_p7 = scmp.lt.s32.totalorder %s2531_s26, %s2599_s4 }
 0x1a2   : > { %p1754_p5 = scmp.lt.s32.totalorder %s1752_s11, %s1748_s30 }
 0x1a3   : > { %p1750_p6 = pnand %p1749_p1, %p1978_p12 }
 0x1a4   : > { %p1755_p8 = por %p1754_p5, %p1753_p7 }
 0x1a5   : > { %p1751_p4 = pneg %p1750_p6 }
 0x1a7   : > { %p1756_p9 = pnand %p1755_p8, %p1751_p4 }
 0x1a9   : > { %1759 = shalt.err (!%p1756_p9)
}
 0x1aa   : > { %s1866_s10 = smov 128   ;;  %s1867_s5 = smov 8  }
 0x1ab   : > { %1590 = dma.vmem_to_hbm [thread:$0]  (%p1978_p12), %s2526_s8, 512, %s2531_s26, %s2535_s28, %s1866_s10, %s1866_s10, %s1867_s5  }
 0x1ac PF: > { %p1601_p10 = scmp.ge.s32.totalorder %s1856_s27, 2  ;;  %s1112_s7 = sand.u32 1, %s1816_s18  }
 0x1ad   : > { %s1113_s12 = scalar_lea.sflag [#allocation6], %s1112_s7 }
 0x1ae   : > { %p1597_p11 = pnand %p1601_p10, %p1991_p2 }
 0x1b0   : > { %p1598_p13 = pneg %p1597_p11 }
 0x1b2   : > { %1811 = dma.done.wait (%p1598_p13), %s1113_s12, 512  }
 0x1b3   : > { %1813 = vsyncadd (%p1598_p13), %s1113_s12, 4294966784  ;;  %s24_s27 = sadd.s32 1, %s1856_s27   ;;  %s2646_s24 = sld [smem:[#allocation11_spill]] }
 0x1b4   : > { %p21_p0 = scmp.ge.s32.totalorder %s24_s27, 6   ;;  %s2647_s13 = sld [smem:[#allocation12_spill]] }
 0x1b5   : > { %s2648_s26 = sld [smem:[#allocation13_spill]]  ;;  %s2649_s18 = smov %s1820_s19 }
 0x1b6   : > { %s2650_s19 = smov %s1824_s20  ;;  %s2651_s20 = smov %s1986_s15 }
 0x1b7   : > { %s2652_s21 = smov %s1832_s22  ;;  %s2653_s22 = smov %s1836_s23 }
 0x1b8   : > { %s2654_s23 = smov %s1983_s14  ;;  %s2655_s0 = smov %s1848_s25 }
 0x1b9   :  { %23 = sbr.rel (!%p21_p0) target bundleno = 14 (0xe), region = 91 }
 0x1ba   : > { %s2656_s25 = smov %s2647_s13 }
 0x1be   :  { %1118 = vsyncpa [#allocation5], 1 }
 0x1bf   :  { %1120 = vsyncpa [#allocation5 + $0x1], 1 }
 0x1c0   :  { %1121 = vsyncpa [#allocation6], 1 }
 0x1c1   :  { %1123 = vsyncpa [#allocation6 + $0x1], 1 }

</bundles_post_ra>
